<compile_context>
chip_gen: v6e
topology: v6e:2x2x1
jax: 0.10.0
libtpu: 0.0.40
codegen_flags: <defaults>
</compile_context>

<pallas_src>
import functools

import jax
import jax.numpy as jnp
from jax.experimental import pallas as pl
from jax.experimental.pallas import tpu as pltpu


def _round_up(x, m):
    return ((x + m - 1) // m) * m


def _channel_mean_kernel(x_ref, o_ref, acc_ref, *, inv_c, tc, tail):
    """Grid = (spatial_tiles, channel_tiles); channel (reduction) axis last.

    acc_ref: (8, TW) f32 partial sums, resident across the channel axis.
    Per step: one full-block load + sublane-group folds (pure VPU adds).
    Epilogue: single XLU collapse to (1, TW) + compile-time 1/C scale.
    """
    c = pl.program_id(1)
    nc = pl.num_programs(1)

    @pl.when(c == 0)
    def _():
        acc_ref[...] = jnp.zeros_like(acc_ref)

    def _accumulate(xv):
        # Fold (tc, TW) -> (8, TW) with 8-aligned value slices (free, no data
        # movement) and plain VPU adds; no per-step cross-sublane XLU work.
        part = xv[0:8, :]
        for i in range(1, tc // 8):
            part = part + xv[i * 8:(i + 1) * 8, :]
        acc_ref[...] += part

    if tail == 0:
        # C is a multiple of TC: every channel block is fully valid.
        _accumulate(x_ref[...].astype(jnp.float32))
    else:
        @pl.when(c < nc - 1)
        def _():
            _accumulate(x_ref[...].astype(jnp.float32))

        @pl.when(c == nc - 1)
        def _():
            # Ragged channel tail: rows >= tail contain stale VMEM garbage
            # (there is no wrapper zero-padding) -> mask before accumulating.
            xv = x_ref[...].astype(jnp.float32)
            rows = jax.lax.broadcasted_iota(jnp.int32, xv.shape, 0)
            _accumulate(jnp.where(rows < tail, xv, 0.0))

    @pl.when(c == nc - 1)
    def _():
        o_ref[...] = (jnp.sum(acc_ref[...], axis=0, keepdims=True)
                      * inv_c).astype(o_ref.dtype)


def channel_mean(v0, *, max_tc=512, max_tw=8192, target_block_bytes=4 * 1024 * 1024):
    """v0: (C, ..., 1) -> mean over axis 0, then squeeze trailing singleton."""
    C = v0.shape[0]
    out_dims = v0.shape[1:]
    if len(out_dims) >= 1 and out_dims[-1] == 1:
        out_dims = out_dims[:-1]  # the .squeeze(-1) of the reference

    # Flatten everything after the channel axis -> lane-dense last dim (free).
    x = v0.reshape(C, -1)
    S = x.shape[1]
    itemsize = jnp.dtype(x.dtype).itemsize
    sub = max(8, 32 // itemsize)  # sublane multiple: 8 f32 / 16 bf16 / 32 int8

    # --- spatial (lane) tile: prefer long contiguous TW ----------------------
    TW_full = _round_up(S, 128)
    TW = min(TW_full, max_tw)
    if TW == TW_full and TW_full > 128:
        # Would be a single spatial tile: cap TW so the "parallel" axis has
        # >= 2 tiles and both v7x TensorCores get work.
        TW = _round_up(-(-S // 2), 128)

    # --- channel (sublane) tile: fill ~target_block_bytes per block ----------
    max_tc_r = max(sub, (max_tc // sub) * sub)
    tc_budget = max(sub, (target_block_bytes // (TW * itemsize)) // sub * sub)
    TC = min(_round_up(C, sub), max_tc_r, tc_budget)

    grid = (pl.cdiv(S, TW), pl.cdiv(C, TC))  # reduction (channel) axis last
    tail = C % TC                            # valid rows in the last channel block
    inv_c = 1.0 / C                          # compile-time 1/C (no divide)
    out_dtype = v0.dtype

    kernel = functools.partial(_channel_mean_kernel, inv_c=inv_c, tc=TC, tail=tail)

    out = pl.pallas_call(
        kernel,
        out_shape=jax.ShapeDtypeStruct((1, S), out_dtype),
        grid_spec=pltpu.PrefetchScalarGridSpec(
            num_scalar_prefetch=0,
            grid=grid,
            in_specs=[pl.BlockSpec((TC, TW), lambda s, c: (c, s))],
            out_specs=pl.BlockSpec((1, TW), lambda s, c: (0, s)),
            scratch_shapes=[pltpu.VMEM((8, TW), jnp.float32)],
        ),
        compiler_params=pltpu.CompilerParams(
            dimension_semantics=("parallel", "arbitrary"),
            vmem_limit_bytes=32 * 1024 * 1024,  # headroom; v5e default is 16 MiB
        ),
        cost_estimate=pl.CostEstimate(
            flops=C * S,
            transcendentals=0,
            bytes_accessed=C * S * itemsize + S * jnp.dtype(out_dtype).itemsize,
        ),
    )(x)

    return out[0, :S].reshape(out_dims)


if __name__ == "__main__":
    key = jax.random.PRNGKey(0)

    # Primary case, matching the module's expected layout: V[0] = (C, H, W, 1).
    # Exercises the 2-spatial-tile split and the in-kernel channel-tail mask
    # (C=4 is not a multiple of the 8-sublane channel tile).
    C, H, W = 4, 16, 16
    v0 = jax.random.normal(key, (C, H, W, 1), dtype=jnp.float32)
    V = [v0]  # module indexes V[0]

    out = channel_mean(V[0])
    out = jax.block_until_ready(out)

    ref = jnp.mean(V[0], axis=0).squeeze(-1)
    assert out.shape == (H, W), out.shape
    assert jnp.allclose(out, ref, atol=1e-5, rtol=1e-5)

    # Ragged sizes: multi-tile grid in both axes, partial last S block, partial
    # last channel block (tail mask), multiple channel accumulation steps.
    k2 = jax.random.PRNGKey(1)
    v1 = jax.random.normal(k2, (20, 16, 20, 1), dtype=jnp.float32)
    out2 = jax.block_until_ready(channel_mean(v1, max_tc=8, max_tw=128))
    ref2 = jnp.mean(v1, axis=0).squeeze(-1)
    assert out2.shape == (16, 20), out2.shape
    assert jnp.allclose(out2, ref2, atol=1e-5, rtol=1e-5)

    # bf16 path: 16-sublane rounding, f32 accumulation, cast on the last step.
    k3 = jax.random.PRNGKey(2)
    v2 = jax.random.normal(k3, (5, 20, 13, 1), dtype=jnp.bfloat16)
    out3 = jax.block_until_ready(channel_mean(v2))
    ref3 = jnp.mean(v2.astype(jnp.float32), axis=0).squeeze(-1)
    assert out3.shape == (20, 13), out3.shape
    assert jnp.allclose(out3.astype(jnp.float32), ref3, atol=2e-2, rtol=2e-2)

    print("KERNEL_OK")
</pallas_src>

<mosaic_0001>
module attributes {stable_mosaic.version = 11 : i64} {
  func.func @_channel_mean_kernel(%arg0: i32, %arg1: i32, %arg2: memref<8x128xf32, #tpu.memory_space<vmem>>, %arg3: memref<1x128xf32, #tpu.memory_space<vmem>>, %arg4: memref<8x128xf32, #tpu.memory_space<vmem>>) attributes {dimension_semantics = [#tpu.dimension_semantics<parallel>, #tpu.dimension_semantics<arbitrary>], iteration_bounds = array<i64: 2, 1>, scalar_prefetch = 0 : i64, scratch_operands = 1 : i64, tpu.core_type = #tpu.core_type<tc>, window_params = [{transform_indices = @transform_0, window_bounds = array<i64: 8, 128>}, {transform_indices = @transform_1, window_bounds = array<i64: 1, 128>}]} {
    %c0_i32 = arith.constant 0 : i32
    %0 = arith.cmpi eq, %arg1, %c0_i32 : i32
    %1 = arith.extui %0 : i1 to i32
    %c0_i32_0 = arith.constant 0 : i32
    %2 = arith.cmpi ne, %1, %c0_i32_0 : i32
    scf.if %2 {
      %cst = arith.constant 0.000000e+00 : f32
      %12 = vector.broadcast %cst : f32 to vector<8x128xf32>
      %c0 = arith.constant 0 : index
      %c0_7 = arith.constant 0 : index
      %13 = vector.load %arg4[%c0, %c0_7] : memref<8x128xf32, #tpu.memory_space<vmem>>, vector<8x128xf32>
      tpu.vector_store %arg4[%c0, %c0_7], %12 {strides = array<i32>} : memref<8x128xf32, #tpu.memory_space<vmem>>, vector<8x128xf32>,
    } else {
    }
    %c0_i32_1 = arith.constant 0 : i32
    %3 = arith.cmpi slt, %arg1, %c0_i32_1 : i32
    %4 = arith.extui %3 : i1 to i32
    %c0_i32_2 = arith.constant 0 : i32
    %5 = arith.cmpi ne, %4, %c0_i32_2 : i32
    scf.if %5 {
      %c0 = arith.constant 0 : index
      %c0_7 = arith.constant 0 : index
      %12 = vector.load %arg2[%c0, %c0_7] : memref<8x128xf32, #tpu.memory_space<vmem>>, vector<8x128xf32>
      %c0_8 = arith.constant 0 : index
      %c0_9 = arith.constant 0 : index
      %13 = vector.load %arg4[%c0_8, %c0_9] : memref<8x128xf32, #tpu.memory_space<vmem>>, vector<8x128xf32>
      %14 = arith.addf %13, %12 : vector<8x128xf32>
      %c0_10 = arith.constant 0 : index
      %c0_11 = arith.constant 0 : index
      %15 = vector.load %arg4[%c0_10, %c0_11] : memref<8x128xf32, #tpu.memory_space<vmem>>, vector<8x128xf32>
      tpu.vector_store %arg4[%c0_10, %c0_11], %14 {strides = array<i32>} : memref<8x128xf32, #tpu.memory_space<vmem>>, vector<8x128xf32>,
    } else {
    }
    %c0_i32_3 = arith.constant 0 : i32
    %6 = arith.cmpi eq, %arg1, %c0_i32_3 : i32
    %7 = arith.extui %6 : i1 to i32
    %c0_i32_4 = arith.constant 0 : i32
    %8 = arith.cmpi ne, %7, %c0_i32_4 : i32
    scf.if %8 {
      %c0 = arith.constant 0 : index
      %c0_7 = arith.constant 0 : index
      %12 = vector.load %arg2[%c0, %c0_7] : memref<8x128xf32, #tpu.memory_space<vmem>>, vector<8x128xf32>
      %13 = tpu.iota {dimensions = array<i32: 0>} : vector<8x128xi32>
      %c4_i32 = arith.constant 4 : i32
      %14 = vector.broadcast %c4_i32 : i32 to vector<8x128xi32>
      %15 = arith.cmpi slt, %13, %14 : vector<8x128xi32>
      %cst = arith.constant 0.000000e+00 : f32
      %16 = vector.broadcast %cst : f32 to vector<8x128xf32>
      %17 = arith.select %15, %12, %16 : vector<8x128xi1>, vector<8x128xf32>
      %c0_8 = arith.constant 0 : index
      %c0_9 = arith.constant 0 : index
      %18 = vector.load %arg4[%c0_8, %c0_9] : memref<8x128xf32, #tpu.memory_space<vmem>>, vector<8x128xf32>
      %19 = arith.addf %18, %17 : vector<8x128xf32>
      %c0_10 = arith.constant 0 : index
      %c0_11 = arith.constant 0 : index
      %20 = vector.load %arg4[%c0_10, %c0_11] : memref<8x128xf32, #tpu.memory_space<vmem>>, vector<8x128xf32>
      tpu.vector_store %arg4[%c0_10, %c0_11], %19 {strides = array<i32>} : memref<8x128xf32, #tpu.memory_space<vmem>>, vector<8x128xf32>,
    } else {
    }
    %c0_i32_5 = arith.constant 0 : i32
    %9 = arith.cmpi eq, %arg1, %c0_i32_5 : i32
    %10 = arith.extui %9 : i1 to i32
    %c0_i32_6 = arith.constant 0 : i32
    %11 = arith.cmpi ne, %10, %c0_i32_6 : i32
    scf.if %11 {
      %c0 = arith.constant 0 : index
      %c0_7 = arith.constant 0 : index
      %12 = vector.load %arg4[%c0, %c0_7] : memref<8x128xf32, #tpu.memory_space<vmem>>, vector<8x128xf32>
      %cst = arith.constant dense<0.000000e+00> : vector<128xf32>
      %13 = vector.multi_reduction <add>, %12, %cst [0] : vector<8x128xf32> to vector<128xf32>
      %14 = vector.shape_cast %13 : vector<128xf32> to vector<1x128xf32>
      %cst_8 = arith.constant 2.500000e-01 : f32
      %15 = vector.broadcast %cst_8 : f32 to vector<1x128xf32>
      %16 = arith.mulf %14, %15 : vector<1x128xf32>
      %c0_9 = arith.constant 0 : index
      %c0_10 = arith.constant 0 : index
      %17 = vector.load %arg3[%c0_9, %c0_10] : memref<1x128xf32, #tpu.memory_space<vmem>>, vector<1x128xf32>
      tpu.vector_store %arg3[%c0_9, %c0_10], %16 {strides = array<i32>} : memref<1x128xf32, #tpu.memory_space<vmem>>, vector<1x128xf32>,
    } else {
    }
    return
  }
  func.func @transform_0(%arg0: i32, %arg1: i32) -> (i32, i32) {
    %c0_i32 = arith.constant 0 : i32
    return %arg1, %arg0 : i32, i32
  }
  func.func @transform_1(%arg0: i32, %arg1: i32) -> (i32, i32) {
    %c0_i32 = arith.constant 0 : i32
    %c0_i32_0 = arith.constant 0 : i32
    return %c0_i32, %arg0 : i32, i32
  }
}

</mosaic_0001>

<bundles_post_ra>
// kernel: tpu_custom_call.1
= control target key start
LH: loop header
LB: loop body
LE: loop exit
PB: predicated region body
PF: predicated region fallthrough
CT: control target
= control target key end

     0   :  { %6 = vsyncpa [#allocation4], 0  ;;  %s587_s0 = inlined_call_operand.hbm [shape: f32[4,256], index: 0, kind: input, shape index: {}]   ;;  %s588_s1 = inlined_call_operand.hbm [shape: f32[1,256], index: 1, kind: output, shape index: {}]  }
   0x1   :  { %8 = vsyncpa [#allocation4 + $0x1], 0 }
   0x2   :  { %9 = vsyncpa [#allocation5], 0 }
   0x3   :  { %11 = vsyncpa [#allocation5 + $0x1], 0  ;;  %s469_s6 = smov 0   ;;  %s471_s7 = smov 0  }
   0x4   :  { %s473_s8 = smov 0   ;;  %s475_s9 = smov 0  }
   0x5   :  { %s477_s10 = smov 0   ;;  %s479_s11 = smov 0  }
   0x6 LB: > { %s279_s12 = sadd.s32 4294967295, %s452_s11   ;;  %s280_s13 = sadd.s32 4294967294, %s452_s11   ;;  %s452_s11 = sphi %s479_s11, %s17_s11   ;;  %s448_s10 = sphi %s477_s10, %s598_s10   ;;  %s444_s9 = sphi %s475_s9, %s597_s9   ;;  %s440_s8 = sphi %s473_s8, %s596_s8   ;;  %s436_s7 = sphi %s471_s7, %s595_s7   ;;  %s432_s6 = sphi %s469_s6, %s594_s6  }
   0x7   : > { %s29_s14 = sadd.s32 1, %s448_s10  ;;  %s38_s15 = sadd.s32 1, %s440_s8 }
   0x8   : > { %p31_p0 = scmp.ge.s32.totalorder %s29_s14, 2  ;;  %p45_p1 = scmp.ne.s32.totalorder %s440_s8, %s436_s7 }
   0x9   : > { %p46_p2 = scmp.eq.s32.totalorder %s452_s11, 0  ;;  %p51_p3 = scmp.ne.s32.totalorder %s436_s7, %s432_s6 }
   0xa   : > { %s600_s14 = smov (%p31_p0, %s29_s14), 0  ;;  %p52_p5 = scmp.eq.s32.totalorder %s279_s12, 0 }
   0xb   : > { %p47_p4 = por %p46_p2, %p45_p1  ;;  %s34_s16 = ssub.s32 %s448_s10, %s600_s14 }
   0xc   : > { %p75_p6 = scmp.eq.s32.totalorder %s279_s12, 1  ;;  %p36_p7 = scmp.eq.s32.totalorder %s34_s16, 0 }
   0xd   : > { %p512_p8 = por %p52_p5, %p51_p3  ;;  %p81_p10 = scmp.eq.s32.totalorder %s280_s13, 1 }
   0xe   : > { %p516_p9 = por %p75_p6, %p45_p1  ;;  %p589_p12 = scmp.ge.s32.totalorder %s452_s11, 2 }
   0xf   : > { %s521_s19 = scalar_select %p36_p7, %s440_s8, %s38_s15  }
  0x10   : > { %p523_p11 = por %p81_p10, %p51_p3  ;;  %97 = sbr.rel (%p589_p12) target bundleno = 41 (0x29), region = 16 }
  0x15   : > { %100 = sbr.rel (!%p47_p4) target bundleno = 41 (0x29), region = 20  ;;  %s101_s21 = sand.u32 (%p47_p4), 1, %s440_s8  }
  0x16   : > { %s283_s22 = sshll.u32 (%p47_p4), %s101_s21, 3  ;;  %s102_s23 = scalar_lea.sflag (%p47_p4), [#allocation4], %s101_s21 }
  0x17   : > { %s105_s24 = scalar_lea.vmem (%p47_p4), [#allocation3], %s283_s22 }
  0x1a   : > { %111 = vsyncadd %s102_s23, 64  ;;  %s284_s25 = sshll.u32 %s448_s10, 6  ;;  %s118_s26 = sshll.u32 %s105_s24, 4  ;;  %s119_s26 = int_to_ptr.vmem [resolvable:$true] %s118_s26 }
  0x1b   : > { %s116_s29 = scalar_lea.hbm %s587_s0, %s284_s25  ;;  %s360_s30 = scalar_lea.vmem %s119_s26, 64 }
  0x1c   : > { %p361_p13 = scmp.ne.s32.totalorder %s119_s26, %s360_s30  ;;  %s454_s2 = smov [#allocation3]  }
  0x1d   : > { %s362_s3 = sshll.u32 %s454_s2, 4  ;;  %s363_s3 = int_to_ptr.vmem [resolvable:$false] %s362_s3 }
  0x1e   : > { %s364_s4 = scalar_lea.vmem %s363_s3, 256  ;;  %p365_p0 = scmp.lt.s32.totalorder %s119_s26, %s363_s3 }
  0x1f   : > { %p366_p1 = scmp.lt.s32.totalorder %s364_s4, %s360_s30 }
  0x21   : > { %p367_p2 = por %p366_p1, %p365_p0 }
  0x23   : > { %p368_p3 = pnand %p367_p2, %p361_p13 }
  0x25   : > { %371 = shalt.err (!%p368_p3)
}
  0x26   : > { %s455_s5 = smov 128   ;;  %s456_s12 = smov 64  }
  0x27   : > { %s457_s13 = smov 4  }
  0x28   : > { %124 = dma.hbm_to_vmem [thread:$0]  %s116_s29, 64, %s119_s26, %s102_s23, %s455_s5, %s456_s12, %s457_s13  }
  0x29 PF: > { %p285_p4 = scmp.ge.s32.totalorder %s452_s11, 1  ;;  %p126_p5 = scmp.lt.s32.totalorder %s452_s11, 3 }
  0x2b   : > { %p127_p6 = pnand %p285_p4, %p126_p5 }
  0x2c   : > { %s538_s15 = sand.u32 (!%p127_p6), 1, %s436_s7  }
  0x2d   : > { %130 = sbr.rel (%p127_p6) target bundleno = 79 (0x4f), region = 24  ;;  %s286_s16 = sshll.u32 (!%p127_p6), %s538_s15, 3 }
  0x2e   : > { %s133_s21 = scalar_lea.sflag (!%p127_p6), [#allocation4], %s538_s15  ;;  %s136_s22 = scalar_lea.vmem (!%p127_p6), [#allocation3], %s286_s16 }
  0x32   : > { %423 = dma.done.wait (%p512_p8), %s133_s21, 128  }
  0x33   : > { %425 = vsyncadd (%p512_p8), %s133_s21, 4294967168  ;;  %v287_v0 = vld [vmem:[%s136_s22] sm:$0xf]  ;;  %s153_s23 = scalar_lea.vmem [#allocation6], %s538_s15  ;;  %s288_s25 = sshll.u32 %s444_s9, 4 }
  0x34   : > { %v182_v1 = vrot.slane %v287_v0, 4  ;;  %s203_s24 = sshll.u32 %s153_s23, 4  ;;  %s201_s17 = scalar_lea.hbm %s588_s1, %s288_s25  ;;  %s204_s24 = int_to_ptr.vmem [resolvable:$true] %s203_s24 }
  0x35   : > { %s191_s28 = scalar_lea.sflag [#allocation5], %s538_s15  ;;  %s372_s29 = scalar_lea.vmem %s204_s24, 16 }
  0x36   : > { %v183_v2 = vadd.f32 %v287_v0, %v182_v1  ;;  %p373_p7 = scmp.ne.s32.totalorder %s204_s24, %s372_s29  ;;  %s458_s30 = smov [#allocation6]  }
  0x37   : > { %s376_s2 = sshll.u32 %s458_s30, 4  ;;  %s377_s2 = int_to_ptr.vmem [resolvable:$false] %s376_s2 }
  0x38   : > { %v184_v3 = vrot.slane %v183_v2, 2  ;;  %p374_p8 = pnand %p373_p7, %p516_p9  ;;  %s378_s3 = scalar_lea.vmem %s377_s2, 32 }
  0x39   : > { %p379_p13 = scmp.lt.s32.totalorder %s204_s24, %s377_s2  ;;  %p380_p0 = scmp.lt.s32.totalorder %s378_s3, %s372_s29 }
  0x3a   : > { %v185_v4 = vadd.f32 %v184_v3, %v183_v2  ;;  %p375_p10 = pneg %p374_p8 }
  0x3b   : > { %p381_p1 = por %p380_p0, %p379_p13 }
  0x3c   : > { %v186_v5 = vrot.slane %v185_v4, 1 }
  0x3d   : > { %p382_p2 = pnand %p381_p1, %p375_p10 }
  0x3e   : > { %v187_v6 = vadd.f32 %v186_v5, %v185_v4 }
  0x40   : > { %v188_v7 = vmul.f32 0.25, %v187_v6 }
  0x42   : > { %189 = vst [vmem:[%s153_s23] sm:$0x1] %v188_v7 }
  0x43   : > { %385 = shalt.err (!%p382_p2)
}
  0x44   : > { %s386_s9 = scalar_lea.hbm %s201_s17, 16  ;;  %s390_s12 = scalar_lea.hbm %s588_s1, 32 }
  0x45   : > { %p387_p3 = scmp.ne.s32.totalorder %s201_s17, %s386_s9  ;;  %p391_p6 = scmp.lt.s32.totalorder %s201_s17, %s588_s1 }
  0x46   : > { %p392_p7 = scmp.lt.s32.totalorder %s390_s12, %s386_s9 }
  0x47   : > { %p388_p4 = pnand %p387_p3, %p516_p9 }
  0x48   : > { %p393_p8 = por %p392_p7, %p391_p6 }
  0x49   : > { %p389_p5 = pneg %p388_p4 }
  0x4b   : > { %p394_p12 = pnand %p393_p8, %p389_p5 }
  0x4d   : > { %397 = shalt.err (!%p394_p12)
}
  0x4e   : > { %292 = dma.vmem_to_hbm [thread:$0]  (%p516_p9), %s204_s24, 16, %s201_s17, %s191_s28  }
  0x4f PF: > { %s215_s16 = sand.u32 1, %s432_s6   ;;  %p593_p10 = scmp.ge.s32.totalorder %s452_s11, 2 }
  0x50   : > { %s216_s21 = scalar_lea.sflag [#allocation5], %s215_s16 }
  0x51   : > { %p295_p13 = pnand %p593_p10, %p523_p11 }
  0x53   : > { %p296_p0 = pneg %p295_p13 }
  0x55   : > { %427 = dma.done.wait (%p296_p0), %s216_s21, 16  }
  0x56   : > { %429 = vsyncadd (%p296_p0), %s216_s21, 4294967280  ;;  %s17_s11 = sadd.s32 1, %s452_s11   ;;  %s594_s6 = smov %s436_s7 }
  0x57   : > { %p14_p1 = scmp.ge.s32.totalorder %s17_s11, 4   ;;  %s595_s7 = smov %s440_s8 }
  0x58   : > { %s596_s8 = smov %s521_s19  ;;  %s597_s9 = smov %s448_s10 }
  0x59   : > { %s598_s10 = smov %s600_s14  ;;  %16 = sbr.rel (!%p14_p1) target bundleno = 6 (0x6), region = 81 }
  0x5e   :  { %220 = vsyncpa [#allocation4], 1 }
  0x5f   :  { %222 = vsyncpa [#allocation4 + $0x1], 1 }
  0x60   :  { %223 = vsyncpa [#allocation5], 1 }
  0x61   :  { %225 = vsyncpa [#allocation5 + $0x1], 1 }

</bundles_post_ra>
